<compile_context>
chip_gen: v5e
topology: v5e:2x2
jax: 0.10.0
libtpu: 0.0.40
codegen_flags: <defaults>
</compile_context>

<pallas_src>
import jax
import jax.numpy as jnp
from jax.experimental import pallas as pl
from jax.experimental.pallas import tpu as pltpu


_TARGET_BLOCK_BYTES = 4 << 20   # per x block; live VMEM ~ 4x block (in+out, 2-deep)
_VMEM_LIMIT_BYTES = 48 << 20    # explicit: above v5e's 16 MiB default, below v7x physical


# --------------------------------------------------------------------------
# Layout / block choosers
# --------------------------------------------------------------------------
def _divisors(n):
    ds = set()
    i = 1
    while i * i <= n:
        if n % i == 0:
            ds.add(i)
            ds.add(n // i)
        i += 1
    return sorted(ds)


def _choose_layout(N, C, D, H, W):
    """Fold D into the channel (sublane) axis for density when the remaining
    lane extent H*W stays 128-aligned; otherwise keep the full D*H*W lane axis
    if that is 128-aligned; else fold anyway (full-extent lane block)."""
    HW, DHW = H * W, D * H * W
    if HW % 128 == 0 or DHW % 128 != 0:
        return C * D, HW, D        # folded: (N, C*D, H*W), param repeat = D
    return C, DHW, 1               # unfolded: (N, C, D*H*W)


def _choose_blocks(N, Cf, L, itemsize, target_bytes=_TARGET_BLOCK_BYTES):
    row_bytes = Cf * itemsize
    # Lane block: largest 128-multiple divisor of L under budget (exact tiling
    # -> unmasked stores and no padded lanes feeding the init reduction).
    if L % 128 == 0:
        lane_divs = [128 * d for d in _divisors(L // 128)]
        fit = [lb for lb in lane_divs if row_bytes * lb <= target_bytes]
        lb = max(fit) if fit else 128
    else:
        # TODO(synk): non-128-aligned spatial extent is taken whole; for
        # extremely large ragged extents this single block may exceed VMEM.
        lb = L
    # Batch block: largest divisor of N under budget.
    fit = [nb for nb in _divisors(N) if nb * row_bytes * lb <= target_bytes]
    nb = max(fit) if fit else 1
    # v7x megacore: keep at least 2 grid steps so both TensorCores get work.
    if (N // nb) * pl.cdiv(L, lb) < 2:
        smaller = [d for d in _divisors(N) if d < nb]
        if smaller:
            nb = max(smaller)
        elif L % 256 == 0 and lb % 256 == 0:
            lb //= 2
    return nb, lb


# --------------------------------------------------------------------------
# Kernel 1: steady-state forward  out = x * scale + shift   (scale = exp(ls))
# --------------------------------------------------------------------------
def _actnorm_apply_kernel(x_ref, scale_ref, shift_ref, o_ref):
    # x_ref: (nb, Cf, lb); scale/shift: (1, Cf, 1) broadcast on the VPU.
    o_ref[...] = (x_ref[...] * scale_ref[...] + shift_ref[...]).astype(o_ref.dtype)


def actnorm_apply(x5, log_scale, shift):
    """x5: (N, C, D, H, W); log_scale, shift: (C,)."""
    N, C, D, H, W = x5.shape
    Cf, L, rep = _choose_layout(N, C, D, H, W)
    xf = x5.reshape(N, Cf, L)                       # free reshape (contiguous)

    # Keep bf16/f16 math for low-precision inputs (halves vreg pressure);
    # f32 math otherwise.  exp() is hoisted out of the kernel.
    cdtype = jnp.float32 if jnp.dtype(x5.dtype) == jnp.dtype(jnp.float32) else x5.dtype
    scale = jnp.exp(log_scale.astype(jnp.float32)).astype(cdtype)
    shf = shift.astype(cdtype)
    if rep > 1:
        scale = jnp.repeat(scale, rep)
        shf = jnp.repeat(shf, rep)
    scale = scale.reshape(1, Cf, 1)
    shf = shf.reshape(1, Cf, 1)

    nb, lb = _choose_blocks(N, Cf, L, jnp.dtype(xf.dtype).itemsize)
    grid = (N // nb, pl.cdiv(L, lb))

    out = pl.pallas_call(
        _actnorm_apply_kernel,
        out_shape=jax.ShapeDtypeStruct((N, Cf, L), xf.dtype),
        grid=grid,
        in_specs=[
            pl.BlockSpec((nb, Cf, lb), lambda i, j: (i, 0, j)),   # x
            pl.BlockSpec((1, Cf, 1), lambda i, j: (0, 0, 0)),     # scale
            pl.BlockSpec((1, Cf, 1), lambda i, j: (0, 0, 0)),     # shift
        ],
        out_specs=pl.BlockSpec((nb, Cf, lb), lambda i, j: (i, 0, j)),
        compiler_params=pltpu.CompilerParams(
            dimension_semantics=("parallel", "parallel"),
            vmem_limit_bytes=_VMEM_LIMIT_BYTES),
    )(xf, scale, shf)
    return out.reshape(N, C, D, H, W)


# --------------------------------------------------------------------------
# Kernel 2: data-dependent init statistics (first forward call).
# Emits per-batch-block partial sums / sums-of-squares; the batch-block axis
# is "parallel" (megacore-sharded), the lane-block axis is "arbitrary" and is
# accumulated into the resident output block.
# --------------------------------------------------------------------------
def _actnorm_stats_kernel(x_ref, sum_ref, sq_ref):
    @pl.when(pl.program_id(1) == 0)
    def _():
        sum_ref[...] = jnp.zeros_like(sum_ref)
        sq_ref[...] = jnp.zeros_like(sq_ref)

    xb = x_ref[...].astype(jnp.float32)                 # (nb, Cf, lb)
    part = jnp.sum(xb, axis=2)                          # (nb, Cf) lane reduce
    part_sq = jnp.sum(xb * xb, axis=2)                  # (nb, Cf)
    sum_ref[...] += jnp.sum(part, axis=0, keepdims=True)[None]     # (1, 1, Cf)
    sq_ref[...] += jnp.sum(part_sq, axis=0, keepdims=True)[None]   # (1, 1, Cf)


def actnorm_init(x5, eps=1e-6):
    """Returns (log_scale, shift), each shaped (C,), matching the PyTorch init."""
    N, C, D, H, W = x5.shape
    Cf, L, rep = _choose_layout(N, C, D, H, W)
    xf = x5.reshape(N, Cf, L)
    nb, lb = _choose_blocks(N, Cf, L, jnp.dtype(xf.dtype).itemsize)
    g0, g1 = N // nb, pl.cdiv(L, lb)

    psum, psq = pl.pallas_call(
        _actnorm_stats_kernel,
        out_shape=(jax.ShapeDtypeStruct((g0, 1, Cf), jnp.float32),
                   jax.ShapeDtypeStruct((g0, 1, Cf), jnp.float32)),
        grid=(g0, g1),
        in_specs=[pl.BlockSpec((nb, Cf, lb), lambda i, j: (i, 0, j))],
        out_specs=(pl.BlockSpec((1, 1, Cf), lambda i, j: (i, 0, 0)),
                   pl.BlockSpec((1, 1, Cf), lambda i, j: (i, 0, 0))),
        compiler_params=pltpu.CompilerParams(
            dimension_semantics=("parallel", "arbitrary"),
            vmem_limit_bytes=_VMEM_LIMIT_BYTES),
    )(xf)

    # Tiny finalization in plain JAX: combine batch-block partials, un-fold D.
    s = psum.reshape(g0, C, rep).sum(axis=(0, 2))       # (C,)
    q = psq.reshape(g0, C, rep).sum(axis=(0, 2))        # (C,)
    count = float(N * D * H * W)
    mean = s / count
    var = jnp.maximum(q / count - mean * mean, 0.0)     # cancellation-safe
    std = jnp.sqrt(var + eps)
    inv_std = 1.0 / std
    log_scale = jnp.minimum(jnp.log(inv_std), 0.0)      # stored (clamped)
    shift = -mean * inv_std                             # torch uses UNclamped exp(log(1/std))
    return log_scale, shift


# --------------------------------------------------------------------------
# Module-level forward (mirrors ActNormLP3D.forward, functional state).
# --------------------------------------------------------------------------
def actnorm_lp3d_forward(x, params, num_channels, initialized, eps=1e-6):
    """params = dict(log_scale=(C,), shift=(C,)).  Returns (out, params, True)."""
    to_transpose = x.shape[1] != num_channels
    if to_transpose:
        x = jnp.swapaxes(x, 1, -1)        # glue: put channel dim at position 1
    if not initialized:
        log_scale, shift = actnorm_init(x, eps=eps)
        params = dict(log_scale=log_scale, shift=shift)
    out = actnorm_apply(x, params["log_scale"], params["shift"])
    if to_transpose:
        out = jnp.swapaxes(out, 1, -1)
    return out, params, True


# --------------------------------------------------------------------------
# Pure-JAX reference (matches the PyTorch forward, incl. first-call init).
# --------------------------------------------------------------------------
def actnorm_lp3d_ref(x, num_channels, eps=1e-6):
    to_transpose = x.shape[1] != num_channels
    if to_transpose:
        x = jnp.swapaxes(x, 1, -1)
    red = (0, 2, 3, 4)
    mean = jnp.mean(x, axis=red)
    var = jnp.mean((x - mean[None, :, None, None, None]) ** 2, axis=red)
    std = jnp.sqrt(var + eps)
    log_scale_raw = jnp.log(1.0 / std)
    log_scale = jnp.minimum(log_scale_raw, 0.0)              # clamp(max=0.0)
    shift = -mean * jnp.exp(log_scale_raw)                   # torch: unclamped
    out = (x * jnp.exp(log_scale)[None, :, None, None, None]
           + shift[None, :, None, None, None])
    if to_transpose:
        out = jnp.swapaxes(out, 1, -1)
    return out, log_scale, shift


if __name__ == "__main__":
    N, C, D, H, W = 2, 4, 8, 16, 16
    key = jax.random.PRNGKey(0)
    x = jax.random.normal(key, (N, C, D, H, W), jnp.float32)
    # Distinct per-channel mean / std clearly away from 1 so the
    # clamp(log_scale, max=0) branch is exercised deterministically.
    ch_scale = jnp.array([0.5, 0.8, 1.7, 2.5], jnp.float32)
    ch_mean = jnp.array([-1.0, 0.3, 0.0, 2.0], jnp.float32)
    x = (x * ch_scale[None, :, None, None, None]
         + ch_mean[None, :, None, None, None])

    # First call: uninitialized -> data-dependent init + affine.
    params0 = dict(log_scale=jnp.zeros((C,), jnp.float32),
                   shift=jnp.zeros((C,), jnp.float32))
    out, params, _ = actnorm_lp3d_forward(x, params0, C, initialized=False)
    out = jax.block_until_ready(out)

    ref_out, ref_ls, ref_sh = actnorm_lp3d_ref(x, C)
    ref_out = jax.block_until_ready(ref_out)

    assert out.shape == x.shape
    assert jnp.allclose(params["log_scale"], ref_ls, atol=1e-4, rtol=1e-4), (
        float(jnp.max(jnp.abs(params["log_scale"] - ref_ls))))
    assert jnp.allclose(params["shift"], ref_sh, atol=1e-4, rtol=1e-4), (
        float(jnp.max(jnp.abs(params["shift"] - ref_sh))))
    assert jnp.allclose(out, ref_out, atol=1e-4, rtol=1e-4), (
        float(jnp.max(jnp.abs(out - ref_out))))

    # Second call: already initialized -> steady-state affine-only forward.
    out2, _, _ = actnorm_lp3d_forward(x, params, C, initialized=True)
    out2 = jax.block_until_ready(out2)
    assert jnp.allclose(out2, ref_out, atol=1e-4, rtol=1e-4)

    print("KERNEL_OK")
</pallas_src>

<mosaic_0001>
module attributes {stable_mosaic.version = 11 : i64} {
  func.func @_actnorm_stats_kernel(%arg0: i32, %arg1: i32, %arg2: memref<1x32x256xf32, #tpu.memory_space<vmem>>, %arg3: memref<1x1x32xf32, #tpu.memory_space<vmem>>, %arg4: memref<1x1x32xf32, #tpu.memory_space<vmem>>) attributes {dimension_semantics = [#tpu.dimension_semantics<parallel>, #tpu.dimension_semantics<arbitrary>], iteration_bounds = array<i64: 2, 1>, scalar_prefetch = 0 : i64, scratch_operands = 0 : i64, tpu.core_type = #tpu.core_type<tc>, window_params = [{transform_indices = @transform_0, window_bounds = array<i64: 1, 32, 256>}, {transform_indices = @transform_1, window_bounds = array<i64: 1, 1, 32>}, {transform_indices = @transform_2, window_bounds = array<i64: 1, 1, 32>}]} {
    %c0_i32 = arith.constant 0 : i32
    %0 = arith.cmpi eq, %arg1, %c0_i32 : i32
    %1 = arith.extui %0 : i1 to i32
    %c0_i32_0 = arith.constant 0 : i32
    %2 = arith.cmpi ne, %1, %c0_i32_0 : i32
    scf.if %2 {
      %cst_18 = arith.constant 0.000000e+00 : f32
      %19 = vector.broadcast %cst_18 : f32 to vector<1x1x32xf32>
      %c0_19 = arith.constant 0 : index
      %c0_20 = arith.constant 0 : index
      %c0_21 = arith.constant 0 : index
      %20 = vector.load %arg3[%c0_19, %c0_20, %c0_21] : memref<1x1x32xf32, #tpu.memory_space<vmem>>, vector<1x1x32xf32>
      tpu.vector_store %arg3[%c0_19, %c0_20, %c0_21], %19 {strides = array<i32>} : memref<1x1x32xf32, #tpu.memory_space<vmem>>, vector<1x1x32xf32>,
      %cst_22 = arith.constant 0.000000e+00 : f32
      %21 = vector.broadcast %cst_22 : f32 to vector<1x1x32xf32>
      %c0_23 = arith.constant 0 : index
      %c0_24 = arith.constant 0 : index
      %c0_25 = arith.constant 0 : index
      %22 = vector.load %arg4[%c0_23, %c0_24, %c0_25] : memref<1x1x32xf32, #tpu.memory_space<vmem>>, vector<1x1x32xf32>
      tpu.vector_store %arg4[%c0_23, %c0_24, %c0_25], %21 {strides = array<i32>} : memref<1x1x32xf32, #tpu.memory_space<vmem>>, vector<1x1x32xf32>,
    } else {
    }
    %c0 = arith.constant 0 : index
    %c0_1 = arith.constant 0 : index
    %c0_2 = arith.constant 0 : index
    %3 = vector.load %arg2[%c0, %c0_1, %c0_2] : memref<1x32x256xf32, #tpu.memory_space<vmem>>, vector<1x32x256xf32>
    %cst = arith.constant dense<0.000000e+00> : vector<1x32xf32>
    %4 = vector.multi_reduction <add>, %3, %cst [2] : vector<1x32x256xf32> to vector<1x32xf32>
    %5 = arith.mulf %3, %3 : vector<1x32x256xf32>
    %cst_3 = arith.constant dense<0.000000e+00> : vector<1x32xf32>
    %6 = vector.multi_reduction <add>, %5, %cst_3 [2] : vector<1x32x256xf32> to vector<1x32xf32>
    %c0_4 = arith.constant 0 : index
    %c0_5 = arith.constant 0 : index
    %c0_6 = arith.constant 0 : index
    %7 = vector.load %arg3[%c0_4, %c0_5, %c0_6] : memref<1x1x32xf32, #tpu.memory_space<vmem>>, vector<1x1x32xf32>
    %cst_7 = arith.constant dense<0.000000e+00> : vector<32xf32>
    %8 = vector.multi_reduction <add>, %4, %cst_7 [0] : vector<1x32xf32> to vector<32xf32>
    %9 = vector.shape_cast %8 : vector<32xf32> to vector<1x32xf32>
    %10 = vector.shape_cast %9 : vector<1x32xf32> to vector<1x1x32xf32>
    %11 = arith.addf %7, %10 : vector<1x1x32xf32>
    %c0_8 = arith.constant 0 : index
    %c0_9 = arith.constant 0 : index
    %c0_10 = arith.constant 0 : index
    %12 = vector.load %arg3[%c0_8, %c0_9, %c0_10] : memref<1x1x32xf32, #tpu.memory_space<vmem>>, vector<1x1x32xf32>
    tpu.vector_store %arg3[%c0_8, %c0_9, %c0_10], %11 {strides = array<i32>} : memref<1x1x32xf32, #tpu.memory_space<vmem>>, vector<1x1x32xf32>,
    %c0_11 = arith.constant 0 : index
    %c0_12 = arith.constant 0 : index
    %c0_13 = arith.constant 0 : index
    %13 = vector.load %arg4[%c0_11, %c0_12, %c0_13] : memref<1x1x32xf32, #tpu.memory_space<vmem>>, vector<1x1x32xf32>
    %cst_14 = arith.constant dense<0.000000e+00> : vector<32xf32>
    %14 = vector.multi_reduction <add>, %6, %cst_14 [0] : vector<1x32xf32> to vector<32xf32>
    %15 = vector.shape_cast %14 : vector<32xf32> to vector<1x32xf32>
    %16 = vector.shape_cast %15 : vector<1x32xf32> to vector<1x1x32xf32>
    %17 = arith.addf %13, %16 : vector<1x1x32xf32>
    %c0_15 = arith.constant 0 : index
    %c0_16 = arith.constant 0 : index
    %c0_17 = arith.constant 0 : index
    %18 = vector.load %arg4[%c0_15, %c0_16, %c0_17] : memref<1x1x32xf32, #tpu.memory_space<vmem>>, vector<1x1x32xf32>
    tpu.vector_store %arg4[%c0_15, %c0_16, %c0_17], %17 {strides = array<i32>} : memref<1x1x32xf32, #tpu.memory_space<vmem>>, vector<1x1x32xf32>,
    return
  }
  func.func @transform_0(%arg0: i32, %arg1: i32) -> (i32, i32, i32) {
    %c0_i32 = arith.constant 0 : i32
    %c0_i32_0 = arith.constant 0 : i32
    return %arg0, %c0_i32, %arg1 : i32, i32, i32
  }
  func.func @transform_1(%arg0: i32, %arg1: i32) -> (i32, i32, i32) {
    %c0_i32 = arith.constant 0 : i32
    %c0_i32_0 = arith.constant 0 : i32
    %c0_i32_1 = arith.constant 0 : i32
    return %arg0, %c0_i32, %c0_i32_0 : i32, i32, i32
  }
  func.func @transform_2(%arg0: i32, %arg1: i32) -> (i32, i32, i32) {
    %c0_i32 = arith.constant 0 : i32
    %c0_i32_0 = arith.constant 0 : i32
    %c0_i32_1 = arith.constant 0 : i32
    return %arg0, %c0_i32, %c0_i32_0 : i32, i32, i32
  }
}

</mosaic_0001>

<bundles_post_ra>
// kernel: tpu_custom_call.1
= control target key start
LH: loop header
LB: loop body
LE: loop exit
PB: predicated region body
PF: predicated region fallthrough
CT: control target
= control target key end

     0   :  { %8 = vsyncpa [#allocation3], 0  ;;  %s1003_s0 = inlined_call_operand.hbm [shape: f32[2,32,256], index: 0, kind: input, shape index: {}]   ;;  %s1004_s1 = inlined_call_operand.hbm [shape: f32[2,1,32], index: 1, kind: output, shape index: {0}]   ;;  %s1005_s2 = inlined_call_operand.hbm [shape: f32[2,1,32], index: 2, kind: output, shape index: {1}]  }
   0x1   :  { %10 = vsyncpa [#allocation3 + $0x1], 0 }
   0x2   :  { %11 = vsyncpa [#allocation4], 0 }
   0x3   :  { %13 = vsyncpa [#allocation4 + $0x1], 0 }
   0x4   :  { %14 = vsyncpa [#allocation7], 0 }
   0x5   :  { %16 = vsyncpa [#allocation7 + $0x1], 0  ;;  %s844_s9 = smov 0   ;;  %s846_s10 = smov 0  }
   0x6   :  { %s848_s11 = smov 0   ;;  %s850_s12 = smov 0  }
   0x7   :  { %s852_s13 = smov 0   ;;  %s854_s14 = smov 0  }
   0x8 LB: > { %s593_s15 = sadd.s32 4294967295, %s823_s14   ;;  %s594_s16 = sadd.s32 4294967294, %s823_s14   ;;  %s823_s14 = sphi %s854_s14, %s22_s14   ;;  %s819_s13 = sphi %s852_s13, %s1014_s13   ;;  %s815_s12 = sphi %s850_s12, %s1013_s12   ;;  %s811_s11 = sphi %s848_s11, %s1012_s11   ;;  %s807_s10 = sphi %s846_s10, %s1011_s10   ;;  %s803_s9 = sphi %s844_s9, %s1010_s9  }
   0x9   : > { %s34_s17 = sadd.s32 1, %s819_s13  ;;  %s43_s18 = sadd.s32 1, %s811_s11 }
   0xa   : > { %p36_p0 = scmp.ge.s32.totalorder %s34_s17, 2  ;;  %p50_p1 = scmp.ne.s32.totalorder %s811_s11, %s807_s10 }
   0xb   : > { %p51_p2 = scmp.eq.s32.totalorder %s823_s14, 0  ;;  %p56_p3 = scmp.ne.s32.totalorder %s807_s10, %s803_s9 }
   0xc   : > { %s1016_s17 = smov (%p36_p0, %s34_s17), 0  ;;  %p57_p5 = scmp.eq.s32.totalorder %s593_s15, 0 }
   0xd   : > { %p885_p4 = por %p51_p2, %p50_p1  ;;  %s38_s20 = ssub.s32 %s819_s13, %s1016_s17 }
   0xe   : > { %p80_p6 = scmp.eq.s32.totalorder %s593_s15, 1  ;;  %p41_p7 = scmp.eq.s32.totalorder %s38_s20, 0 }
   0xf   : > { %p891_p8 = por %p57_p5, %p56_p3  ;;  %p86_p10 = scmp.eq.s32.totalorder %s594_s16, 1 }
  0x10   : > { %p895_p9 = por %p80_p6, %p50_p1  ;;  %p596_p12 = scmp.ge.s32.totalorder %s823_s14, 2 }
  0x11   : > { %s900_s23 = scalar_select %p41_p7, %s811_s11, %s43_s18  }
  0x12   : > { %p902_p11 = por %p86_p10, %p56_p3  ;;  %p622_p13 = scmp.lt.s32.totalorder %s823_s14, 2 }
  0x13   : > { %s132_s25 = sand.u32 1, %s811_s11   ;;  %s604_s27 = sshll.u32 %s819_s13, 6 }
  0x14   : > { %s597_s26 = sshll.u32 %s132_s25, 6  ;;  %s143_s30 = scalar_lea.hbm %s1003_s0, %s604_s27 }
  0x15   : > { %s136_s3 = scalar_lea.vmem [#allocation2], %s597_s26  ;;  %s144_s5 = sshll.u32 %s143_s30, 4  ;;  %s145_s5 = int_to_ptr.hbm [resolvable:$true] %s144_s5 }
  0x16   : > { %s146_s4 = sshll.u32 %s136_s3, 4  ;;  %p612_p0 = pnand %p622_p13, %p885_p4  ;;  %s147_s4 = int_to_ptr.vmem [resolvable:$true] %s146_s4 }
  0x17   : > { %p600_p1 = scmp.ge.s32.totalorder %s823_s14, 1  ;;  %s133_s6 = scalar_lea.sflag [#allocation3], %s132_s25 }
  0x18   : > { %s825_s7 = smov 256   ;;  %s826_s8 = smov 16  }
  0x19   : > { %614 = dma.hbm_to_vmem [thread:$0]  (!%p612_p0), %s145_s5, 1024, %s147_s4, %s133_s6, %s825_s7, %s825_s7, %s826_s8  }
  0x1a   : > { %p154_p2 = scmp.lt.s32.totalorder %s823_s14, 3 }
  0x1c   : > { %p155_p3 = pnand %p600_p1, %p154_p2 }
  0x1d   : > { %s918_s15 = sand.u32 (!%p155_p3), 1, %s807_s10  }
  0x1e   : > { %158 = sbr.rel (%p155_p3) target bundleno = 400 (0x190), region = 24  ;;  %s601_s16 = sshll.u32 (!%p155_p3), %s918_s15, 6 }
  0x1f   : > { %s161_s18 = scalar_lea.sflag (!%p155_p3), [#allocation3], %s918_s15  ;;  %s164_s20 = scalar_lea.vmem (!%p155_p3), [#allocation2], %s601_s16 }
  0x23   : > { %790 = dma.done.wait (%p891_p8), %s161_s18, 1024  }
  0x24   : > { %792 = vsyncadd (%p891_p8), %s161_s18, 4294966272  ;;  %v197_v0 = vld [vmem:[%s164_s20] sm:$0xff]  ;;  %v198_v1 = vld [vmem:[%s164_s20 + $0x8] sm:$0xff]  ;;  %v827_v24 = vmov 0   ;;  %vm194_vm0 = vcmask 253952   ;;  %s927_s19 = scalar_lea.vmem [#allocation5], %s918_s15  ;;  %s471_s27 = scalar_lea.hbm %s1004_s1, %s815_s12 }
  0x25   : > { %v205_v2 = vadd.f32 %v198_v1, %v197_v0  ;;  %v201_v3 = vld [vmem:[%s164_s20 + $0x20] sm:$0xff]  ;;  %v202_v4 = vld [vmem:[%s164_s20 + $0x28] sm:$0xff]  ;;  %v217_v5 = vmul.f32 %v197_v0, %v197_v0  ;;  %v218_v6 = vmul.f32 %v198_v1, %v198_v1  ;;  %v199_v9 = vld [vmem:[%s164_s20 + $0x10] sm:$0xff]  ;;  %676 = vset.pattern.permute.xlu2 %v827_v24  ;;  %677 = vset.pattern.permute.xlu0 %v827_v24  ;;  %s932_s21 = scalar_lea.vmem [#allocation6], %s918_s15  ;;  %vm338_vm1 = vcmask 130112   ;;  %s473_s28 = sshll.u32 %s927_s19, 4  ;;  %s474_s28 = int_to_ptr.vmem [resolvable:$true] %s473_s28 }
  0x26   : > { %v211_v7 = vadd.f32 %v202_v4, %v201_v3  ;;  %v200_v10 = vld [vmem:[%s164_s20 + $0x18] sm:$0xff]  ;;  %v203_v11 = vld [vmem:[%s164_s20 + $0x30] sm:$0xff]  ;;  %v219_v13 = vmul.f32 %v199_v9, %v199_v9  ;;  %v221_v18 = vmul.f32 %v201_v3, %v201_v3  ;;  %v222_v19 = vmul.f32 %v202_v4, %v202_v4  ;;  %678 = vset.pattern.permute.xlu1 %v827_v24  ;;  %s475_s29 = sshll.u32 %s471_s27, 4  ;;  %s459_s30 = scalar_lea.sflag [#allocation4], %s918_s15  ;;  %s476_s29 = int_to_ptr.hbm [resolvable:$true] %s475_s29 }
  0x27   : > { %206 = vadd.xlane.f32.xlu0 %v205_v2  ;;  %v225_v8 = vadd.f32 %v218_v6, %v217_v5  ;;  %v204_v12 = vld [vmem:[%s164_s20 + $0x38] sm:$0xff]  ;;  %v220_v14 = vmul.f32 %v200_v10, %v200_v10  ;;  %v208_v15 = vadd.f32 %v200_v10, %v199_v9  ;;  %v223_v20 = vmul.f32 %v203_v11, %v203_v11  ;;  %s723_s3 = sshra.s32 %s476_s29, 4  ;;  %s729_s7 = scalar_lea.hbm %s1004_s1, 2  ;;  %s724_s3 = int_to_ptr.hbm [resolvable:$true] %s723_s3 }
  0x28   : > { %212 = vadd.xlane.f32.xlu1 %v211_v7  ;;  %v214_v16 = vadd.f32 %v204_v12, %v203_v11  ;;  %v224_v21 = vmul.f32 %v204_v12, %v204_v12  ;;  %v231_v22 = vadd.f32 %v222_v19, %v221_v18  ;;  %vm342_vm2 = vcmask 195712   ;;  %s725_s4 = scalar_lea.hbm %s724_s3, 1  ;;  %p730_p7 = scmp.lt.s32.totalorder %s724_s3, %s1004_s1 }
  0x29   : > { %226 = vadd.xlane.f32.xlu2 %v225_v8  ;;  %v228_v17 = vadd.f32 %v220_v14, %v219_v13  ;;  %vm346_vm3 = vcmask 261312   ;;  %p726_p4 = scmp.ne.s32.totalorder %s724_s3, %s725_s4  ;;  %p731_p8 = scmp.lt.s32.totalorder %s729_s7, %s725_s4 }
  0x2a   : > { %v234_v23 = vadd.f32 %v224_v21, %v223_v20 }
  0x2b   : > { %p727_p5 = pnand %p726_p4, %p895_p9  ;;  %p732_p10 = por %p731_p8, %p730_p7 }
  0x2d   : > { %p728_p6 = pneg %p727_p5 }
  0x2f   : > { %209 = vadd.xlane.f32.xlu0 %v208_v15  ;;  %p733_p13 = pnand %p732_p10, %p728_p6 }
  0x30   : > { %215 = vadd.xlane.f32.xlu1 %v214_v16 }
  0x31   : > { %229 = vadd.xlane.f32.xlu2 %v228_v17 }
  0x37   : > { %232 = vadd.xlane.f32.xlu0 %v231_v22 }
  0x38   : > { %235 = vadd.xlane.f32.xlu1 %v234_v23 }
  0x9a   : > { %v207_v25 = vpop.xlane.xlu0 %206 }
  0x9b   : > { %v246_v26 = vperm.slane %v207_v25, 0  ;;  %v247_v27 = vperm.slane %v207_v25, 1  ;;  %v248_v28 = vperm.slane %v207_v25, 2  ;;  %v249_v29 = vperm.slane %v207_v25, 3  ;;  %v213_v44 = vpop.xlane.xlu1 %212 }
  0x9c   : > { %v250_v30 = vperm.slane %v207_v25, 4  ;;  %v251_v31 = vperm.slane %v207_v25, 5  ;;  %v252_v32 = vperm.slane %v207_v25, 6  ;;  %v253_v33 = vperm.slane %v207_v25, 7  ;;  %v227_v0 = vpop.xlane.xlu2 %226 }
  0x9d   : > { %278 = vst [vmem:[#allocation1] ss:$9 sm:$0xff] %v246_v26  ;;  %v262_v45 = vperm.slane %v213_v44, 0  ;;  %v263_v46 = vperm.slane %v213_v44, 1  ;;  %v264_v47 = vperm.slane %v213_v44, 2  ;;  %v265_v49 = vperm.slane %v213_v44, 3 }
  0x9e   : > { %280 = vst [vmem:[#allocation1 + $0x1] ss:$9 sm:$0xff] %v247_v27  ;;  %v266_v50 = vperm.slane %v213_v44, 4  ;;  %v267_v51 = vperm.slane %v213_v44, 5  ;;  %v268_v52 = vperm.slane %v213_v44, 6  ;;  %v269_v53 = vperm.slane %v213_v44, 7 }
  0x9f   : > { %282 = vst [vmem:[#allocation1 + $0x2] ss:$9 sm:$0xff] %v248_v28  ;;  %v361_v1 = vperm.slane %v227_v0, 0  ;;  %v362_v2 = vperm.slane %v227_v0, 1  ;;  %v363_v3 = vperm.slane %v227_v0, 2  ;;  %v364_v5 = vperm.slane %v227_v0, 3 }
  0xa0   : > { %284 = vst [vmem:[#allocation1 + $0x3] ss:$9 sm:$0xff] %v249_v29  ;;  %v365_v6 = vperm.slane %v227_v0, 4  ;;  %v366_v7 = vperm.slane %v227_v0, 5  ;;  %v367_v8 = vperm.slane %v227_v0, 6  ;;  %v368_v9 = vperm.slane %v227_v0, 7 }
  0xa1   : > { %286 = vst [vmem:[#allocation1 + $0x4] ss:$9 sm:$0xff] %v250_v30  ;;  %v333_v44 = vlaneseq }
  0xa2   : > { %288 = vst [vmem:[#allocation1 + $0x5] ss:$9 sm:$0xff] %v251_v31  ;;  %v210_v34 = vpop.xlane.xlu0 %209 }
  0xa3   : > { %290 = vst [vmem:[#allocation1 + $0x6] ss:$9 sm:$0xff] %v252_v32  ;;  %v254_v35 = vperm.slane %v210_v34, 0  ;;  %v255_v36 = vperm.slane %v210_v34, 1  ;;  %v256_v37 = vperm.slane %v210_v34, 2  ;;  %v257_v39 = vperm.slane %v210_v34, 3  ;;  %v216_v54 = vpop.xlane.xlu1 %215 }
  0xa4   : > { %292 = vst [vmem:[#allocation1 + $0x7] ss:$9 sm:$0xff] %v253_v33  ;;  %v258_v40 = vperm.slane %v210_v34, 4  ;;  %v259_v41 = vperm.slane %v210_v34, 5  ;;  %v260_v42 = vperm.slane %v210_v34, 6  ;;  %v261_v43 = vperm.slane %v210_v34, 7  ;;  %v230_v10 = vpop.xlane.xlu2 %229 }
  0xa5   : > { %v270_v55 = vperm.slane %v216_v54, 0  ;;  %v271_v56 = vperm.slane %v216_v54, 1  ;;  %v272_v57 = vperm.slane %v216_v54, 2  ;;  %v273_v59 = vperm.slane %v216_v54, 3 }
  0xa6   : > { %v274_v60 = vperm.slane %v216_v54, 4  ;;  %v275_v61 = vperm.slane %v216_v54, 5  ;;  %v276_v62 = vperm.slane %v216_v54, 6  ;;  %v277_v63 = vperm.slane %v216_v54, 7 }
  0xa7   : > { %v369_v11 = vperm.slane %v230_v10, 0  ;;  %v370_v12 = vperm.slane %v230_v10, 1  ;;  %v371_v13 = vperm.slane %v230_v10, 2  ;;  %v372_v15 = vperm.slane %v230_v10, 3 }
  0xa8   : > { %v373_v16 = vperm.slane %v230_v10, 4  ;;  %v374_v17 = vperm.slane %v230_v10, 5  ;;  %v375_v18 = vperm.slane %v230_v10, 6  ;;  %v376_v19 = vperm.slane %v230_v10, 7 }
  0xaa   : > { %v233_v20 = vpop.xlane.xlu0 %232 }
  0xab   : > { %v293_v38 = vld [vmem:[#allocation1] sm:$0xff]  ;;  %v377_v21 = vperm.slane %v233_v20, 0  ;;  %v378_v22 = vperm.slane %v233_v20, 1  ;;  %v379_v23 = vperm.slane %v233_v20, 2  ;;  %v380_v24 = vperm.slane %v233_v20, 3  ;;  %v236_v30 = vpop.xlane.xlu1 %235 }
  0xac   : > { %294 = vst [vmem:[#allocation1] ss:$9 sm:$0xff] %v254_v35  ;;  %322 = vperm.xlu2 %676, %v293_v38   ;;  %v381_v26 = vperm.slane %v233_v20, 4  ;;  %v382_v27 = vperm.slane %v233_v20, 5  ;;  %v383_v28 = vperm.slane %v233_v20, 6  ;;  %v384_v29 = vperm.slane %v233_v20, 7 }
  0xad   : > { %295 = vst [vmem:[#allocation1 + $0x1] ss:$9 sm:$0xff] %v255_v36  ;;  %v385_v31 = vperm.slane %v236_v30, 0  ;;  %v386_v32 = vperm.slane %v236_v30, 1  ;;  %v387_v33 = vperm.slane %v236_v30, 2  ;;  %v388_v34 = vperm.slane %v236_v30, 3 }
  0xae   : > { %296 = vst [vmem:[#allocation1 + $0x2] ss:$9 sm:$0xff] %v256_v37  ;;  %v389_v36 = vperm.slane %v236_v30, 4  ;;  %v390_v37 = vperm.slane %v236_v30, 5  ;;  %v391_v38 = vperm.slane %v236_v30, 6 }
  0xaf   : > { %297 = vst [vmem:[#allocation1 + $0x3] ss:$9 sm:$0xff] %v257_v39  ;;  %v392_v39 = vperm.slane %v236_v30, 7 }
  0xb0   : > { %298 = vst [vmem:[#allocation1 + $0x4] ss:$9 sm:$0xff] %v258_v40 }
  0xb1   : > { %299 = vst [vmem:[#allocation1 + $0x5] ss:$9 sm:$0xff] %v259_v41  ;;  %v828_v41 = vmov 0.0  }
  0xb2   : > { %300 = vst [vmem:[#allocation1 + $0x6] ss:$9 sm:$0xff] %v260_v42 }
  0xb3   : > { %301 = vst [vmem:[#allocation1 + $0x7] ss:$9 sm:$0xff] %v261_v43 }
  0xb4   : > { %195 = vst.msk [vmem:[%s927_s19] sm:$0x1] %vm194_vm0, %v828_v41 }
  0xb5   : > { %196 = vst.msk [vmem:[%s932_s21] sm:$0x1] %vm194_vm0, %v828_v41 }
  0xba   : > { %v302_v48 = vld [vmem:[#allocation1] sm:$0xff] }
  0xbb   : > { %303 = vst [vmem:[#allocation1] ss:$9 sm:$0xff] %v262_v45  ;;  %325 = vperm.xlu0 %677, %v302_v48   ;;  %v334_v45 = vand.u32 127, %v333_v44 }
  0xbc   : > { %304 = vst [vmem:[#allocation1 + $0x1] ss:$9 sm:$0xff] %v263_v46 }
  0xbd   : > { %305 = vst [vmem:[#allocation1 + $0x2] ss:$9 sm:$0xff] %v264_v47  ;;  %v336_v46 = vadd.s32 4294967288, %v334_v45 }
  0xbe   : > { %306 = vst [vmem:[#allocation1 + $0x3] ss:$9 sm:$0xff] %v265_v49 }
  0xbf   : > { %307 = vst [vmem:[#allocation1 + $0x4] ss:$9 sm:$0xff] %v266_v50  ;;  %v340_v50 = vadd.s32 4294967280, %v334_v45 }
  0xc0   : > { %308 = vst [vmem:[#allocation1 + $0x5] ss:$9 sm:$0xff] %v267_v51 }
  0xc1   : > { %309 = vst [vmem:[#allocation1 + $0x6] ss:$9 sm:$0xff] %v268_v52  ;;  %v344_v52 = vadd.s32 4294967272, %v334_v45 }
  0xc2   : > { %310 = vst [vmem:[#allocation1 + $0x7] ss:$9 sm:$0xff] %v269_v53 }
  0xc9   : > { %v311_v58 = vld [vmem:[#allocation1] sm:$0xff] }
  0xca   : > { %312 = vst [vmem:[#allocation1] ss:$9 sm:$0xff] %v270_v55  ;;  %328 = vperm.xlu2 %676, %v311_v58  }
  0xcb   : > { %313 = vst [vmem:[#allocation1 + $0x1] ss:$9 sm:$0xff] %v271_v56  ;;  %v237_v56 = vld [vmem:[%s927_s19] sm:$0x1] }
  0xcc   : > { %314 = vst [vmem:[#allocation1 + $0x2] ss:$9 sm:$0xff] %v272_v57 }
  0xcd   : > { %315 = vst [vmem:[#allocation1 + $0x3] ss:$9 sm:$0xff] %v273_v59 }
  0xce   : > { %316 = vst [vmem:[#allocation1 + $0x4] ss:$9 sm:$0xff] %v274_v60 }
  0xcf   : > { %317 = vst [vmem:[#allocation1 + $0x5] ss:$9 sm:$0xff] %v275_v61 }
  0xd0   : > { %318 = vst [vmem:[#allocation1 + $0x6] ss:$9 sm:$0xff] %v276_v62 }
  0xd1   : > { %319 = vst [vmem:[#allocation1 + $0x7] ss:$9 sm:$0xff] %v277_v63 }
  0xd8   : > { %v320_v4 = vld [vmem:[#allocation1] sm:$0xff] }
  0xd9   : > { %393 = vst [vmem:[#allocation1] ss:$9 sm:$0xff] %v361_v1 }
  0xda   : > { %395 = vst [vmem:[#allocation1 + $0x1] ss:$9 sm:$0xff] %v362_v2 }
  0xdb   : > { %397 = vst [vmem:[#allocation1 + $0x2] ss:$9 sm:$0xff] %v363_v3 }
  0xdc   : > { %399 = vst [vmem:[#allocation1 + $0x3] ss:$9 sm:$0xff] %v364_v5 }
  0xdd   : > { %401 = vst [vmem:[#allocation1 + $0x4] ss:$9 sm:$0xff] %v365_v6 }
  0xde   : > { %403 = vst [vmem:[#allocation1 + $0x5] ss:$9 sm:$0xff] %v366_v7 }
  0xdf   : > { %405 = vst [vmem:[#allocation1 + $0x6] ss:$9 sm:$0xff] %v367_v8 }
  0xe0   : > { %407 = vst [vmem:[#allocation1 + $0x7] ss:$9 sm:$0xff] %v368_v9 }
  0xe7   : > { %v408_v14 = vld [vmem:[#allocation1] sm:$0xff] }
  0xe8   : > { %409 = vst [vmem:[#allocation1] ss:$9 sm:$0xff] %v369_v11  ;;  %437 = vperm.xlu1 %678, %v408_v14  }
  0xe9   : > { %410 = vst [vmem:[#allocation1 + $0x1] ss:$9 sm:$0xff] %v370_v12 }
  0xea   : > { %411 = vst [vmem:[#allocation1 + $0x2] ss:$9 sm:$0xff] %v371_v13 }
  0xeb   : > { %412 = vst [vmem:[#allocation1 + $0x3] ss:$9 sm:$0xff] %v372_v15 }
  0xec   : > { %413 = vst [vmem:[#allocation1 + $0x4] ss:$9 sm:$0xff] %v373_v16 }
  0xed   : > { %414 = vst [vmem:[#allocation1 + $0x5] ss:$9 sm:$0xff] %v374_v17 }
  0xee   : > { %415 = vst [vmem:[#allocation1 + $0x6] ss:$9 sm:$0xff] %v375_v18 }
  0xef   : > { %416 = vst [vmem:[#allocation1 + $0x7] ss:$9 sm:$0xff] %v376_v19 }
  0xf6   : > { %v417_v25 = vld [vmem:[#allocation1] sm:$0xff] }
  0xf7   : > { %440 = vperm.xlu2 %676, %v417_v25   ;;  %418 = vst [vmem:[#allocation1] ss:$9 sm:$0xff] %v377_v21 }
  0xf8   : > { %419 = vst [vmem:[#allocation1 + $0x1] ss:$9 sm:$0xff] %v378_v22 }
  0xf9   : > { %420 = vst [vmem:[#allocation1 + $0x2] ss:$9 sm:$0xff] %v379_v23 }
  0xfa   : > { %421 = vst [vmem:[#allocation1 + $0x3] ss:$9 sm:$0xff] %v380_v24 }
  0xfb   : > { %422 = vst [vmem:[#allocation1 + $0x4] ss:$9 sm:$0xff] %v381_v26 }
  0xfc   : > { %423 = vst [vmem:[#allocation1 + $0x5] ss:$9 sm:$0xff] %v382_v27 }
  0xfd   : > { %424 = vst [vmem:[#allocation1 + $0x6] ss:$9 sm:$0xff] %v383_v28 }
  0xfe   : > { %425 = vst [vmem:[#allocation1 + $0x7] ss:$9 sm:$0xff] %v384_v29 }
  0xff   : > { %331 = vperm.xlu2 %676, %v320_v4  }
 0x105   : > { %v426_v35 = vld [vmem:[#allocation1] sm:$0xff] }
 0x106   : > { %443 = vperm.xlu1 %678, %v426_v35   ;;  %427 = vst [vmem:[#allocation1] ss:$9 sm:$0xff] %v385_v31  ;;  %v323_v42 = vpop.permute.xlu2 %322 }
 0x107   : > { %428 = vst [vmem:[#allocation1 + $0x1] ss:$9 sm:$0xff] %v386_v32  ;;  %v335_v51 = vperm.slane %v323_v42, %v334_v45 }
 0x108   : > { %429 = vst [vmem:[#allocation1 + $0x2] ss:$9 sm:$0xff] %v387_v33 }
 0x109   : > { %430 = vst [vmem:[#allocation1 + $0x3] ss:$9 sm:$0xff] %v388_v34 }
 0x10a   : > { %431 = vst [vmem:[#allocation1 + $0x4] ss:$9 sm:$0xff] %v389_v36 }
 0x10b   : > { %432 = vst [vmem:[#allocation1 + $0x5] ss:$9 sm:$0xff] %v390_v37 }
 0x10c   : > { %433 = vst [vmem:[#allocation1 + $0x6] ss:$9 sm:$0xff] %v391_v38 }
 0x10d   : > { %434 = vst [vmem:[#allocation1 + $0x7] ss:$9 sm:$0xff] %v392_v39 }
 0x114   : > { %v435_v40 = vld [vmem:[#allocation1] sm:$0xff] }
 0x115   : > { %446 = vperm.xlu1 %678, %v435_v40  }
 0x124   : > { %v329_v43 = vpop.permute.xlu2 %328 }
 0x125   : > { %v341_v54 = vperm.slane %v329_v43, %v340_v50 }
 0x12d   : > { %v326_v47 = vpop.permute.xlu0 %325 }
 0x12e   : > { %v337_v49 = vperm.slane %v326_v47, %v336_v46 }
 0x130   : > { %v339_v53 = vsel %vm338_vm1, %v337_v49, %v335_v51 }
 0x131   : > { %v343_v58 = vsel %vm342_vm2, %v341_v54, %v339_v53 }
 0x151   : > { %v441_v48 = vpop.permute.xlu2 %440 }
 0x159   : > { %v332_v55 = vpop.permute.xlu2 %331 }
 0x15a   : > { %v345_v57 = vperm.slane %v332_v55, %v344_v52 }
 0x15c   : > { %v347_v59 = vsel %vm346_vm3, %v345_v57, %v343_v58 }
 0x15d   : > { %v349_v60 = vadd.f32 %v347_v59, %v237_v56 }
 0x15f   : > { %351 = vst.msk [vmem:[%s927_s19] sm:$0x1] %vm194_vm0, %v349_v60 }
 0x160   : > { %736 = shalt.err (!%p733_p13)
}
 0x161   : > { %607 = dma.vmem_to_hbm [thread:$0]  (%p895_p9), %s474_s28, 16, %s476_s29, %s459_s30   ;;  %v438_v61 = vpop.permute.xlu1 %437  ;;  %v449_v1 = vperm.slane %v441_v48, %v336_v46  ;;  %v352_v4 = vld [vmem:[%s932_s21] sm:$0x1] }
 0x162   : > { %v448_v63 = vperm.slane %v438_v61, %v334_v45  ;;  %s484_s19 = scalar_lea.hbm %s1005_s2, %s815_s12  ;;  %s486_s25 = sshll.u32 %s932_s21, 4  ;;  %s487_s25 = int_to_ptr.vmem [resolvable:$true] %s486_s25 }
 0x163   : > { %s488_s26 = sshll.u32 %s484_s19, 4  ;;  %s463_s27 = scalar_lea.sflag [#allocation7], %s918_s15  ;;  %s489_s26 = int_to_ptr.hbm [resolvable:$true] %s488_s26 }
 0x164   : > { %v450_v3 = vsel %vm338_vm1, %v449_v1, %v448_v63  ;;  %s751_s12 = sshra.s32 %s489_s26, 4  ;;  %s757_s3 = scalar_lea.hbm %s1005_s2, 2  ;;  %s752_s12 = int_to_ptr.hbm [resolvable:$true] %s751_s12 }
 0x165   : > { %s753_s28 = scalar_lea.hbm %s752_s12, 1  ;;  %p758_p3 = scmp.lt.s32.totalorder %s752_s12, %s1005_s2 }
 0x166   : > { %p754_p0 = scmp.ne.s32.totalorder %s752_s12, %s753_s28  ;;  %p759_p4 = scmp.lt.s32.totalorder %s757_s3, %s753_s28 }
 0x168   : > { %p755_p1 = pnand %p754_p0, %p895_p9  ;;  %p760_p5 = por %p759_p4, %p758_p3 }
 0x16a   : > { %p756_p2 = pneg %p755_p1 }
 0x16c   : > { %p761_p6 = pnand %p760_p5, %p756_p2 }
 0x178   : > { %v444_v62 = vpop.permute.xlu1 %443 }
 0x179   : > { %v451_v0 = vperm.slane %v444_v62, %v340_v50 }
 0x17b   : > { %v452_v6 = vsel %vm342_vm2, %v451_v0, %v450_v3 }
 0x187   : > { %v447_v2 = vpop.permute.xlu1 %446 }
 0x188   : > { %v453_v5 = vperm.slane %v447_v2, %v344_v52 }
 0x18a   : > { %v454_v7 = vsel %vm346_vm3, %v453_v5, %v452_v6 }
 0x18b   : > { %v456_v8 = vadd.f32 %v454_v7, %v352_v4 }
 0x18d   : > { %457 = vst.msk [vmem:[%s932_s21] sm:$0x1] %vm194_vm0, %v456_v8 }
 0x18e   : > { %764 = shalt.err (!%p761_p6)
}
 0x18f   : > { %608 = dma.vmem_to_hbm [thread:$0]  (%p895_p9), %s487_s25, 16, %s489_s26, %s463_s27  }
 0x190 PF: > { %s500_s15 = sand.u32 1, %s803_s9   ;;  %p616_p7 = pnand %p596_p12, %p902_p11 }
 0x191   : > { %s501_s21 = scalar_lea.sflag [#allocation4], %s500_s15 }
 0x192   : > { %p617_p8 = pneg %p616_p7 }
 0x194   : > { %794 = dma.done.wait (%p617_p8), %s501_s21, 16  }
 0x195   : > { %796 = vsyncadd (%p617_p8), %s501_s21, 4294967280  ;;  %s510_s6 = scalar_lea.sflag [#allocation7], %s500_s15 }
 0x196   : > { %798 = dma.done.wait (%p617_p8), %s510_s6, 16  }
 0x197   : > { %800 = vsyncadd (%p617_p8), %s510_s6, 4294967280  ;;  %s22_s14 = sadd.s32 1, %s823_s14   ;;  %s1010_s9 = smov %s807_s10 }
 0x198   : > { %p19_p10 = scmp.ge.s32.totalorder %s22_s14, 4   ;;  %s1011_s10 = smov %s811_s11 }
 0x199   : > { %s1012_s11 = smov %s900_s23  ;;  %s1013_s12 = smov %s819_s13 }
 0x19a   : > { %s1014_s13 = smov %s1016_s17  ;;  %21 = sbr.rel (!%p19_p10) target bundleno = 8 (0x8), region = 104 }
 0x19f   :  { %515 = vsyncpa [#allocation3], 1 }
 0x1a0   :  { %517 = vsyncpa [#allocation3 + $0x1], 1 }
 0x1a1   :  { %518 = vsyncpa [#allocation4], 1 }
 0x1a2   :  { %520 = vsyncpa [#allocation4 + $0x1], 1 }
 0x1a3   :  { %521 = vsyncpa [#allocation7], 1 }
 0x1a4   :  { %523 = vsyncpa [#allocation7 + $0x1], 1 }

</bundles_post_ra>
